<compile_context>
chip_gen: v6e
topology: v6e:2x2x1
jax: 0.10.0
libtpu: 0.0.40
codegen_flags: <defaults>
</compile_context>

<pallas_src>
import functools

import jax
import jax.numpy as jnp
from jax.experimental import pallas as pl
from jax.experimental.pallas import tpu as pltpu

IGNORE_INDEX = 255


def _ce_partial_kernel(logits_ref, tgt_ref, sum_ref, cnt_ref, *, hw, tile_p):
    # logits_ref: (1, C, TP)  class-major, pixels on lanes
    # tgt_ref:    (1, 1, TP)  int32 labels
    # sum_ref / cnt_ref: (1, 1, 1, 128) per-tile partial outputs
    x = logits_ref[0].astype(jnp.float32)                 # (C, TP)
    tgt = tgt_ref[0]                                      # (1, TP)

    # Numerically stable log-sum-exp over the class (sublane) axis.
    m = jnp.max(x, axis=0, keepdims=True)                 # (1, TP)
    lse = m + jnp.log(jnp.sum(jnp.exp(x - m), axis=0, keepdims=True))

    # Gather the target-class logit via a one-hot select over the class axis.
    class_ids = jax.lax.broadcasted_iota(jnp.int32, x.shape, 0)       # (C, TP)
    tgt_logit = jnp.sum(jnp.where(class_ids == tgt, x, 0.0),
                        axis=0, keepdims=True)                        # (1, TP)

    # Valid pixels: not ignore_index and inside the (possibly overhanging) tile.
    col = (jax.lax.broadcasted_iota(jnp.int32, tgt.shape, 1)
           + pl.program_id(1) * tile_p)
    valid = jnp.logical_and(tgt != IGNORE_INDEX, col < hw)

    per_pixel = jnp.where(valid, lse - tgt_logit, 0.0)     # NLL per pixel
    psum = jnp.sum(per_pixel)
    pcnt = jnp.sum(valid.astype(jnp.float32))

    sum_ref[...] = jnp.broadcast_to(psum, sum_ref.shape)
    cnt_ref[...] = jnp.broadcast_to(pcnt, cnt_ref.shape)


@functools.partial(jax.jit, static_argnames=("tile_p",))
def cross_entropy_loss(logits_nchw, targets_nhw, tile_p=None):
    """Mean cross-entropy over pixels, ignoring label 255.

    logits_nchw: (N, C, H, W) float (f32 or bf16)
    targets_nhw: (N, H, W)    int labels
    returns scalar float32 (NaN if every pixel is ignored, matching torch).
    """
    N, C, H, W = logits_nchw.shape
    HW = H * W

    # Free views only: NCHW -> (N, C, HW) and (N, 1, HW). No transpose / pad copy.
    logits = logits_nchw.reshape(N, C, HW)
    targets = targets_nhw.reshape(N, 1, HW).astype(jnp.int32)

    if tile_p is None:
        # ~2 MiB of f32 logits per tile: big enough to amortize per-step
        # overhead, small enough (with double-buffering + elementwise temps)
        # for the 32 MiB scoped VMEM default on every TPU generation.
        tile_p = (2 * 1024 * 1024) // (C * 4)
        tile_p = max(128, min(tile_p, 1 << 16))
    if tile_p >= HW:
        tile_p = HW                       # full-dim block: always a legal shape
        grid_p = 1
    else:
        tile_p = max(128, (tile_p // 128) * 128)   # lane-aligned tile
        grid_p = pl.cdiv(HW, tile_p)               # overhang masked in kernel

    kernel = functools.partial(_ce_partial_kernel, hw=HW, tile_p=tile_p)

    psums, pcnts = pl.pallas_call(
        kernel,
        out_shape=(
            jax.ShapeDtypeStruct((N, grid_p, 1, 128), jnp.float32),
            jax.ShapeDtypeStruct((N, grid_p, 1, 128), jnp.float32),
        ),
        grid_spec=pltpu.PrefetchScalarGridSpec(
            num_scalar_prefetch=0,
            grid=(N, grid_p),
            in_specs=[
                pl.BlockSpec((1, C, tile_p), lambda n, t: (n, 0, t)),
                pl.BlockSpec((1, 1, tile_p), lambda n, t: (n, 0, t)),
            ],
            out_specs=[
                pl.BlockSpec((1, 1, 1, 128), lambda n, t: (n, t, 0, 0)),
                pl.BlockSpec((1, 1, 1, 128), lambda n, t: (n, t, 0, 0)),
            ],
        ),
        compiler_params=pltpu.CompilerParams(
            dimension_semantics=("parallel", "parallel")),
    )(logits, targets)

    total = jnp.sum(psums[:, :, 0, 0])
    count = jnp.sum(pcnts[:, :, 0, 0])
    return total / count


def _reference_ce(logits_nchw, targets_nhw):
    # Pure-JAX reference matching torch.nn.CrossEntropyLoss(ignore_index=255).
    N, C, H, W = logits_nchw.shape
    lg = jnp.transpose(logits_nchw, (0, 2, 3, 1)).reshape(-1, C).astype(jnp.float32)
    tg = targets_nhw.reshape(-1)
    valid = tg != IGNORE_INDEX
    tg_safe = jnp.where(valid, tg, 0)
    logz = jax.nn.logsumexp(lg, axis=-1)
    nll = logz - jnp.take_along_axis(lg, tg_safe[:, None], axis=-1)[:, 0]
    nll = jnp.where(valid, nll, 0.0)
    return jnp.sum(nll) / jnp.sum(valid.astype(jnp.float32))


if __name__ == "__main__":
    # TODO(synk): tensorboard scalar logging from the PyTorch module has no
    # Pallas/JAX equivalent and is intentionally omitted.
    key = jax.random.PRNGKey(0)
    k1, k2, k3 = jax.random.split(key, 3)

    N, C, H, W = 2, 4, 16, 16
    logits = jax.random.normal(k1, (N, C, H, W), dtype=jnp.float32)
    targets = jax.random.randint(k2, (N, H, W), 0, C, dtype=jnp.int32)
    # Sprinkle in some ignore_index pixels.
    ignore_mask = jax.random.bernoulli(k3, 0.1, (N, H, W))
    targets = jnp.where(ignore_mask, IGNORE_INDEX, targets)

    loss = cross_entropy_loss(logits, targets)
    jax.block_until_ready(loss)

    ref = _reference_ce(logits, targets)
    assert jnp.allclose(loss, ref, atol=1e-5, rtol=1e-5), (loss, ref)

    print("KERNEL_OK")
</pallas_src>

<mosaic_0001>
module attributes {stable_mosaic.version = 11 : i64} {
  func.func @_ce_partial_kernel(%arg0: i32, %arg1: i32, %arg2: memref<1x4x256xf32, #tpu.memory_space<vmem>>, %arg3: memref<1x1x256xi32, #tpu.memory_space<vmem>>, %arg4: memref<1x1x1x128xf32, #tpu.memory_space<vmem>>, %arg5: memref<1x1x1x128xf32, #tpu.memory_space<vmem>>) attributes {dimension_semantics = [#tpu.dimension_semantics<parallel>, #tpu.dimension_semantics<parallel>], iteration_bounds = array<i64: 2, 1>, scalar_prefetch = 0 : i64, scratch_operands = 0 : i64, tpu.core_type = #tpu.core_type<tc>, window_params = [{transform_indices = @transform_0, window_bounds = array<i64: 1, 4, 256>}, {transform_indices = @transform_1, window_bounds = array<i64: 1, 1, 256>}, {transform_indices = @transform_2, window_bounds = array<i64: 1, 1, 1, 128>}, {transform_indices = @transform_3, window_bounds = array<i64: 1, 1, 1, 128>}]} {
    %c0 = arith.constant 0 : index
    %c0_0 = arith.constant 0 : index
    %c0_1 = arith.constant 0 : index
    %0 = vector.load %arg2[%c0, %c0_0, %c0_1] : memref<1x4x256xf32, #tpu.memory_space<vmem>>, vector<1x4x256xf32>
    %1 = vector.shape_cast %0 : vector<1x4x256xf32> to vector<4x256xf32>
    %c0_2 = arith.constant 0 : index
    %c0_3 = arith.constant 0 : index
    %c0_4 = arith.constant 0 : index
    %2 = vector.load %arg3[%c0_2, %c0_3, %c0_4] : memref<1x1x256xi32, #tpu.memory_space<vmem>>, vector<1x1x256xi32>
    %3 = vector.shape_cast %2 : vector<1x1x256xi32> to vector<1x256xi32>
    %cst = arith.constant dense<0xFF800000> : vector<256xf32>
    %4 = vector.multi_reduction <maximumf>, %1, %cst [0] : vector<4x256xf32> to vector<256xf32>
    %5 = vector.shape_cast %4 : vector<256xf32> to vector<1x256xf32>
    %6 = vector.broadcast %5 : vector<1x256xf32> to vector<4x256xf32>
    %7 = arith.subf %1, %6 : vector<4x256xf32>
    %8 = math.exp %7 : vector<4x256xf32>
    %cst_5 = arith.constant dense<0.000000e+00> : vector<256xf32>
    %9 = vector.multi_reduction <add>, %8, %cst_5 [0] : vector<4x256xf32> to vector<256xf32>
    %10 = vector.shape_cast %9 : vector<256xf32> to vector<1x256xf32>
    %11 = math.log %10 : vector<1x256xf32>
    %12 = arith.addf %5, %11 : vector<1x256xf32>
    %13 = tpu.iota {dimensions = array<i32: 0>} : vector<4x256xi32>
    %14 = vector.broadcast %3 : vector<1x256xi32> to vector<4x256xi32>
    %15 = arith.cmpi eq, %13, %14 : vector<4x256xi32>
    %cst_6 = arith.constant 0.000000e+00 : f32
    %16 = vector.broadcast %cst_6 : f32 to vector<4x256xf32>
    %17 = arith.select %15, %1, %16 : vector<4x256xi1>, vector<4x256xf32>
    %cst_7 = arith.constant dense<0.000000e+00> : vector<256xf32>
    %18 = vector.multi_reduction <add>, %17, %cst_7 [0] : vector<4x256xf32> to vector<256xf32>
    %19 = vector.shape_cast %18 : vector<256xf32> to vector<1x256xf32>
    %20 = tpu.iota {dimensions = array<i32: 1>} : vector<1x256xi32>
    %c256_i32 = arith.constant 256 : i32
    %21 = arith.muli %arg1, %c256_i32 : i32
    %22 = vector.broadcast %21 : i32 to vector<1x256xi32>
    %23 = arith.addi %20, %22 : vector<1x256xi32>
    %c255_i32 = arith.constant 255 : i32
    %24 = vector.broadcast %c255_i32 : i32 to vector<1x256xi32>
    %25 = arith.cmpi ne, %3, %24 : vector<1x256xi32>
    %c256_i32_8 = arith.constant 256 : i32
    %26 = vector.broadcast %c256_i32_8 : i32 to vector<1x256xi32>
    %27 = arith.cmpi slt, %23, %26 : vector<1x256xi32>
    %28 = arith.andi %25, %27 : vector<1x256xi1>
    %29 = arith.subf %12, %19 : vector<1x256xf32>
    %cst_9 = arith.constant 0.000000e+00 : f32
    %30 = vector.broadcast %cst_9 : f32 to vector<1x256xf32>
    %31 = arith.select %28, %29, %30 : vector<1x256xi1>, vector<1x256xf32>
    %32 = vector.shape_cast %31 : vector<1x256xf32> to vector<1x1x256xf32>
    %cst_10 = arith.constant dense<0.000000e+00> : vector<1xf32>
    %33 = vector.multi_reduction <add>, %32, %cst_10 [1, 2] : vector<1x1x256xf32> to vector<1xf32>
    %34 = vector.shape_cast %33 : vector<1xf32> to vector<1x1x1xf32>
    %35 = vector.extract %34[0, 0, 0] : f32 from vector<1x1x1xf32>
    %36 = arith.extui %28 : vector<1x256xi1> to vector<1x256xi32>
    %37 = arith.sitofp %36 : vector<1x256xi32> to vector<1x256xf32>
    %38 = vector.shape_cast %37 : vector<1x256xf32> to vector<1x1x256xf32>
    %cst_11 = arith.constant dense<0.000000e+00> : vector<1xf32>
    %39 = vector.multi_reduction <add>, %38, %cst_11 [1, 2] : vector<1x1x256xf32> to vector<1xf32>
    %40 = vector.shape_cast %39 : vector<1xf32> to vector<1x1x1xf32>
    %41 = vector.extract %40[0, 0, 0] : f32 from vector<1x1x1xf32>
    %42 = vector.broadcast %35 : f32 to vector<1x1x1x128xf32>
    %c0_12 = arith.constant 0 : index
    %c0_13 = arith.constant 0 : index
    %c0_14 = arith.constant 0 : index
    %c0_15 = arith.constant 0 : index
    %43 = vector.load %arg4[%c0_12, %c0_13, %c0_14, %c0_15] : memref<1x1x1x128xf32, #tpu.memory_space<vmem>>, vector<1x1x1x128xf32>
    tpu.vector_store %arg4[%c0_12, %c0_13, %c0_14, %c0_15], %42 {strides = array<i32>} : memref<1x1x1x128xf32, #tpu.memory_space<vmem>>, vector<1x1x1x128xf32>,
    %44 = vector.broadcast %41 : f32 to vector<1x1x1x128xf32>
    %c0_16 = arith.constant 0 : index
    %c0_17 = arith.constant 0 : index
    %c0_18 = arith.constant 0 : index
    %c0_19 = arith.constant 0 : index
    %45 = vector.load %arg5[%c0_16, %c0_17, %c0_18, %c0_19] : memref<1x1x1x128xf32, #tpu.memory_space<vmem>>, vector<1x1x1x128xf32>
    tpu.vector_store %arg5[%c0_16, %c0_17, %c0_18, %c0_19], %44 {strides = array<i32>} : memref<1x1x1x128xf32, #tpu.memory_space<vmem>>, vector<1x1x1x128xf32>,
    return
  }
  func.func @transform_0(%arg0: i32, %arg1: i32) -> (i32, i32, i32) {
    %c0_i32 = arith.constant 0 : i32
    %c0_i32_0 = arith.constant 0 : i32
    return %arg0, %c0_i32, %arg1 : i32, i32, i32
  }
  func.func @transform_1(%arg0: i32, %arg1: i32) -> (i32, i32, i32) {
    %c0_i32 = arith.constant 0 : i32
    %c0_i32_0 = arith.constant 0 : i32
    return %arg0, %c0_i32, %arg1 : i32, i32, i32
  }
  func.func @transform_2(%arg0: i32, %arg1: i32) -> (i32, i32, i32, i32) {
    %c0_i32 = arith.constant 0 : i32
    %c0_i32_0 = arith.constant 0 : i32
    %c0_i32_1 = arith.constant 0 : i32
    return %arg0, %arg1, %c0_i32, %c0_i32_0 : i32, i32, i32, i32
  }
  func.func @transform_3(%arg0: i32, %arg1: i32) -> (i32, i32, i32, i32) {
    %c0_i32 = arith.constant 0 : i32
    %c0_i32_0 = arith.constant 0 : i32
    %c0_i32_1 = arith.constant 0 : i32
    return %arg0, %arg1, %c0_i32, %c0_i32_0 : i32, i32, i32, i32
  }
}

</mosaic_0001>

<bundles_post_ra>
// kernel: cross_entropy_loss.1
= control target key start
LH: loop header
LB: loop body
LE: loop exit
PB: predicated region body
PF: predicated region fallthrough
CT: control target
= control target key end

     0   :  { %s652_s12 = smov 0   ;;  %s654_s13 = smov 0   ;;  %s717_s0 = inlined_call_operand.vmem [shape: f32[2,4,256], index: 0, kind: input, shape index: {}]   ;;  %s718_s1 = inlined_call_operand.vmem [shape: s32[2,1,256], index: 1, kind: input, shape index: {}]   ;;  %s719_s2 = inlined_call_operand.vmem [shape: f32[2,1,1,128], index: 2, kind: output, shape index: {0}]   ;;  %s720_s3 = inlined_call_operand.vmem [shape: f32[2,1,1,128], index: 3, kind: output, shape index: {1}]  }
   0x1   :  { %s656_s14 = smov 0  }
   0x2 LB: > { %s26_s15 = sadd.s32 1, %s623_s13  ;;  %p559_p0 = scmp.ge.s32.totalorder %s627_s14, 1  ;;  %s627_s14 = sphi %s656_s14, %s14_s14   ;;  %s623_s13 = sphi %s654_s13, %s722_s13   ;;  %s619_s12 = sphi %s652_s12, %s721_s12  }
   0x3   : > { %p28_p1 = scmp.ge.s32.totalorder %s26_s15, 2  ;;  %p179_p2 = scmp.lt.s32.totalorder %s627_s14, 3 }
   0x5   : > { %s724_s15 = smov (%p28_p1, %s26_s15), 0  ;;  %p180_p3 = pnand %p559_p0, %p179_p2 }
   0x6   : > { %p223_p4 = scmp.lt.s32.totalorder (!%p180_p3), %s619_s12, 1 }
   0x7   : > { %183 = sbr.rel (%p180_p3) target bundleno = 304 (0x130), region = 28 }
   0xc   : > { %s726_s12 = smov (!%p223_p4, %s619_s12), 1  ;;  %vm258_vm0 = vcmask 1043456   ;;  %v303_v18 = vlaneseq  ;;  %v629_v50 = vmov 1966171168   ;;  %v630_v57 = vmov 1  }
   0xd   : > { %s566_s16 = sshll.u32 %s726_s12, 3  ;;  %s562_s20 = sshll.u32 %s726_s12, 1  ;;  %v345_v51 = vunpack.c.l.s4 %v629_v50  ;;  %v343_v58 = vcombine.low %v630_v57, %v630_v57  ;;  %vm392_vm6 = vcmask 1040384  }
   0xe   : > { %s230_s19 = scalar_lea.vmem %s717_s0, %s566_s16  ;;  %v304_v20 = vshrl.u32 %v303_v18, 7  ;;  %s239_s23 = scalar_lea.vmem %s718_s1, %s562_s20 }
   0xf   : > { %v253_v0 = vld [vmem:[%s230_s19] sm:$0xff]  ;;  %v346_v54 = vunpack.c.0.s8 %v345_v51  ;;  %s246_s26 = scalar_lea.vmem %s719_s2, %s726_s12  ;;  %s252_s30 = scalar_lea.vmem %s720_s3, %s726_s12 }
  0x10   : > { %v256_v1 = vcombine.high %v253_v0, %v253_v0  ;;  %v259_v2 = vsel %vm258_vm0, %v253_v0, -inf  ;;  %v685_v21 = vsub.s32 0, %v304_v20  ;;  %v254_v22 = vld [vmem:[%s239_s23] sm:$0x3]  ;;  %v687_v23 = vsub.s32 1, %v304_v20 }
  0x11   : > { %v260_v3 = vrot.slane %v259_v2, 4  ;;  %v349_v59 = vsub.s32 %v346_v54, %v304_v20  ;;  %vm338_vm3 = vcmp.ne.s32.totalorder %v254_v22, 255 }
  0x12   : > { %v266_v4 = vsel %vm258_vm0, %v256_v1, -inf  ;;  %v308_v24 = vrot.slane %v254_v22, %v685_v21  ;;  %v312_v25 = vrot.slane %v254_v22, %v687_v23 }
  0x13   : > { %v261_v5 = vmax.f32 %v259_v2, %v260_v3  ;;  %v267_v6 = vrot.slane %v266_v4, 4  ;;  %v350_v62 = vrot.slane %v343_v58, %v349_v59 }
  0x14   : > { %vm313_vm1 = vcmp.eq.s32.totalorder %v304_v20, %v308_v24  ;;  %vm314_vm2 = vcmp.eq.s32.totalorder %v304_v20, %v312_v25 }
  0x15   : > { %v262_v7 = vrot.slane %v261_v5, 2  ;;  %v268_v8 = vmax.f32 %v266_v4, %v267_v6  ;;  %v315_v30 = vsel %vm313_vm1, %v253_v0, 0.0  ;;  %v316_v34 = vsel %vm314_vm2, %v256_v1, 0.0 }
  0x16   : > { %v317_v35 = vsel %vm258_vm0, %v315_v30, 0.0  ;;  %v324_v38 = vsel %vm258_vm0, %v316_v34, 0.0  ;;  %v357_v6 = vrot.slane %v350_v62, %v349_v59 }
  0x17   : > { %v263_v9 = vmax.f32 %v261_v5, %v262_v7  ;;  %v269_v10 = vrot.slane %v268_v8, 2  ;;  %v318_v41 = vrot.slane %v317_v35, 4  ;;  %v325_v44 = vrot.slane %v324_v38, 4 }
  0x18   : > { %vm358_vm4 = vcmp.ne.s32.totalorder %v357_v6, 0 }
  0x19   : > { %v264_v11 = vrot.slane %v263_v9, 1  ;;  %v270_v12 = vmax.f32 %v268_v8, %v269_v10  ;;  %v319_v47 = vadd.f32 %v318_v41, %v317_v35  ;;  %v326_v49 = vadd.f32 %v325_v44, %v324_v38  ;;  %vm359_vm5 = vmand %vm338_vm3, %vm358_vm4 }
  0x1b   : > { %v265_v13 = vmax.f32 %v263_v9, %v264_v11  ;;  %v271_v14 = vrot.slane %v270_v12, 1  ;;  %v320_v52 = vrot.slane %v319_v47, 2  ;;  %v327_v53 = vrot.slane %v326_v49, 2 }
  0x1d   : > { %v678_v15 = vmax.f32 %v270_v12, %v271_v14  ;;  %v321_v55 = vadd.f32 %v320_v52, %v319_v47  ;;  %v328_v56 = vadd.f32 %v327_v53, %v326_v49  ;;  %v631_v12 = vmov 0.0  }
  0x1e   : > { %v563_v14 = vsel %vm359_vm5, 1.0, %v631_v12 }
  0x1f   : > { %v275_v16 = vcombine.low %v265_v13, %v678_v15  ;;  %v322_v60 = vrot.slane %v321_v55, 1  ;;  %v329_v61 = vrot.slane %v328_v56, 1  ;;  %v415_v18 = vrot.slane %v563_v14, %v687_v23 }
  0x21   : > { %v277_v17 = vsub.f32 %v253_v0, %v275_v16  ;;  %v323_v1 = vadd.f32 %v322_v60, %v321_v55  ;;  %v330_v5 = vadd.f32 %v329_v61, %v328_v56  ;;  %v419_v25 = vsel %vm392_vm6, %v415_v18, 0.0 }
  0x23   : > { %v278_v19 = vmul.f32 1.442695, %v277_v17  ;;  %v411_v17 = vrot.slane %v563_v14, %v685_v21 }
  0x25   : > { %599 = vpow2.f32 %v278_v19  ;;  %v418_v24 = vsel %vm392_vm6, %v411_v17, 0.0 }
  0x32   : > { %v600_v26 = vpop.eup %599 }
  0x33   : > { %v281_v27 = vcombine.high %v600_v26, %v600_v26  ;;  %v283_v28 = vsel %vm258_vm0, %v600_v26, 0.0 }
  0x34   : > { %v284_v29 = vrot.slane %v283_v28, 4 }
  0x35   : > { %v290_v31 = vsel %vm258_vm0, %v281_v27, 0.0  ;;  %v420_v27 = vadd.f32 %v419_v25, %v418_v24 }
  0x36   : > { %v285_v32 = vadd.f32 %v284_v29, %v283_v28  ;;  %v291_v33 = vrot.slane %v290_v31, 4 }
  0x38   : > { %v286_v36 = vrot.slane %v285_v32, 2  ;;  %v292_v37 = vadd.f32 %v291_v33, %v290_v31 }
  0x3a   : > { %v287_v39 = vadd.f32 %v286_v36, %v285_v32  ;;  %v293_v40 = vrot.slane %v292_v37, 2 }
  0x3c   : > { %v288_v42 = vrot.slane %v287_v39, 1  ;;  %v294_v43 = vadd.f32 %v293_v40, %v292_v37 }
  0x3e   : > { %v289_v45 = vadd.f32 %v288_v42, %v287_v39  ;;  %v295_v46 = vrot.slane %v294_v43, 1 }
  0x40   : > { %v296_v48 = vadd.f32 %v295_v46, %v294_v43  ;;  %601 = vlog2.f32 %v289_v45 }
  0x42   : > { %603 = vlog2.f32 %v296_v48 }
  0x4d   : > { %v602_v63 = vpop.eup %601 }
  0x4e   : > { %v298_v0 = vmul.f32 0.6931472, %v602_v63 }
  0x4f   : > { %v604_v2 = vpop.eup %603 }
  0x50   : > { %v300_v3 = vmul.f32 0.6931472, %v604_v2  ;;  %v301_v4 = vadd.f32 %v298_v0, %v265_v13 }
  0x52   : > { %v302_v7 = vadd.f32 %v300_v3, %v678_v15  ;;  %v360_v8 = vsub.f32 %v301_v4, %v323_v1 }
  0x54   : > { %v361_v9 = vsub.f32 %v302_v7, %v330_v5 }
  0x56   : > { %v364_v10 = vcombine.low %v360_v8, %v361_v9 }
  0x58   : > { %v371_v11 = vrot.slane %v364_v10, %v349_v59 }
  0x5a   : > { %v378_v16 = vrot.slane %v371_v11, %v349_v59 }
  0x5c   : > { %v380_v19 = vsel %vm359_vm5, %v378_v16, 0.0 }
  0x5d   : > { %v385_v13 = vrot.slane %v380_v19, %v685_v21  ;;  %v389_v15 = vrot.slane %v380_v19, %v687_v23 }
  0x5f   : > { %v393_v20 = vsel %vm392_vm6, %v385_v13, 0.0  ;;  %v394_v22 = vsel %vm392_vm6, %v389_v15, 0.0 }
  0x60   : > { %v395_v26 = vadd.f32 %v394_v22, %v393_v20 }
  0x62   : > { %396 = vadd.xlane.f32.xlu0 %v395_v26 }
  0x66   : > { %421 = vadd.xlane.f32.xlu0 %v420_v27 }
  0xeb   : > { %v397_v28 = vpop.xlane.xlu0 %396 }
  0xec   : > { %v398_v29 = vrot.slane %v397_v28, 4 }
  0xee   : > { %v399_v30 = vadd.f32 %v398_v29, %v397_v28 }
  0xef   : > { %v422_v31 = vpop.xlane.xlu0 %421 }
  0xf0   : > { %v400_v32 = vrot.slane %v399_v30, 2  ;;  %v423_v33 = vrot.slane %v422_v31, 4 }
  0xf2   : > { %v424_v34 = vadd.f32 %v423_v33, %v422_v31  ;;  %v401_v21 = vadd.f32 %v400_v32, %v399_v30 }
  0xf4   : > { %v425_v35 = vrot.slane %v424_v34, 2  ;;  %v402_v23 = vrot.slane %v401_v21, 1 }
  0xf6   : > { %v426_v36 = vadd.f32 %v425_v35, %v424_v34  ;;  %v403_v37 = vadd.f32 %v402_v23, %v401_v21 }
  0xf8   : > { %567 = vpush %v403_v37  ;;  %v427_v38 = vrot.slane %v426_v36, 1 }
  0xfa   : > { %v428_v39 = vadd.f32 %v427_v38, %v426_v36 }
  0xfc   : > { %569 = vpush %v428_v39 }
 0x129   : > { %s568_s27 = spop %567 }
 0x12a   : > { %v430_v40 = vstv %s568_s27 }
 0x12b   : > { %431 = vst [vmem:[%s246_s26] sm:$0x1] %v430_v40 }
 0x12d   : > { %s570_s4 = spop %569 }
 0x12e   : > { %v432_v41 = vstv %s570_s4 }
 0x12f   : > { %433 = vst [vmem:[%s252_s30] sm:$0x1] %v432_v41 }
 0x130 PF: > { %s14_s14 = sadd.s32 1, %s627_s14   ;;  %s721_s12 = smov %s623_s13 }
 0x131   : > { %p11_p5 = scmp.ge.s32.totalorder %s14_s14, 4   ;;  %s722_s13 = smov %s724_s15 }
 0x133   :  { %13 = sbr.rel (!%p11_p5) target bundleno = 2 (0x2), region = 73 }

</bundles_post_ra>
